<compile_context>
chip_gen: v7x
topology: tpu7x:2x2x1
jax: 0.10.0
libtpu: 0.0.40
codegen_flags: <defaults>
</compile_context>

<pallas_src>
import functools

import jax
import jax.numpy as jnp
from jax.experimental import pallas as pl
from jax.experimental.pallas import tpu as pltpu


def _round_up(x, m):
    return (x + m - 1) // m * m


def _pick_tile(dim, requested, align):
    """Largest tile <= requested that is a multiple of `align` and divides `dim`."""
    assert dim % align == 0
    t = max(align, (min(requested, dim) // align) * align)
    while dim % t:
        t -= align
    return t


# ---------------------------------------------------------------------------
# Aggregation matmul kernel:  out = relu(A_flat @ W + b)
#   A_flat : (M, K)  bf16   dst-row x (relation*src) adjacency
#   W      : (K, F)  bf16   relation-stacked weights / transformed features
#   b      : (1, F)  f32
#   out    : (M, F)  f32
# grid = (M // tile_m [parallel], K // tile_k [arbitrary reduction])
# ---------------------------------------------------------------------------
def _agg_matmul_kernel(flags_ref, a_ref, w_ref, b_ref, o_ref):
    i = pl.program_id(0)          # dst-row tile (parallel)
    k = pl.program_id(1)          # K tile       (reduction, innermost)
    nk = pl.num_programs(1)

    @pl.when(k == 0)
    def _():
        # Fold the bias add into the accumulator init (epilogue is then ReLU-only).
        o_ref[...] = jnp.zeros_like(o_ref) + b_ref[...]

    # Skip MXU work for empty (row-tile, K-tile) adjacency blocks.
    @pl.when(flags_ref[i * nk + k] != 0)
    def _():
        o_ref[...] += jnp.dot(a_ref[...], w_ref[...],
                              preferred_element_type=jnp.float32)

    @pl.when(k == nk - 1)
    def _():
        o_ref[...] = jnp.maximum(o_ref[...], 0.0)


def agg_matmul(block_flags, a_flat, w, b, *, tile_m, tile_k):
    """relu(a_flat @ w + b) with the relation axis folded into K."""
    m, k_dim = a_flat.shape
    f = w.shape[-1]
    assert w.shape[0] == k_dim
    assert m % tile_m == 0 and tile_m % 8 == 0
    assert k_dim % tile_k == 0 and tile_k % 128 == 0
    assert f % 128 == 0, "feature dim must be lane-dense (padded to 128)"
    nm, nk = m // tile_m, k_dim // tile_k
    b2d = b.reshape(1, f).astype(jnp.float32)

    cost = pl.CostEstimate(
        flops=2 * m * k_dim * f,
        transcendentals=0,
        bytes_accessed=(a_flat.size * a_flat.dtype.itemsize
                        + w.size * w.dtype.itemsize + m * f * 4 + f * 4),
    )
    return pl.pallas_call(
        _agg_matmul_kernel,
        out_shape=jax.ShapeDtypeStruct((m, f), jnp.float32),
        grid_spec=pltpu.PrefetchScalarGridSpec(
            num_scalar_prefetch=1,                       # block_flags -> SMEM
            grid=(nm, nk),
            in_specs=[
                # A tile, K-streamed.  (pipeline_mode=pl.Buffered(3) is a
                # v6e-only sweep candidate if VMEM headroom allows.)
                pl.BlockSpec((tile_m, tile_k), lambda i, k, flags: (i, k)),
                pl.BlockSpec((tile_k, f), lambda i, k, flags: (k, 0)),
                pl.BlockSpec((1, f), lambda i, k, flags: (0, 0)),
            ],
            out_specs=pl.BlockSpec((tile_m, f), lambda i, k, flags: (i, 0)),
        ),
        compiler_params=pltpu.CompilerParams(
            dimension_semantics=("parallel", "arbitrary"),
            vmem_limit_bytes=32 * 1024 * 1024,
        ),
        cost_estimate=cost,
    )(block_flags, a_flat, w, b2d)


# ---------------------------------------------------------------------------
# Per-relation feature transform (hoisted out of the reduction loop):
#   XW[r] = x @ W2[r]   x: (N, H) bf16, W2: (R, H, F) bf16  ->  (R, N, F) bf16
# ---------------------------------------------------------------------------
def _feat_transform_kernel(x_ref, w_ref, o_ref):
    o_ref[...] = jnp.dot(x_ref[...], w_ref[...],
                         preferred_element_type=jnp.float32).astype(o_ref.dtype)


def feat_transform(x, w):
    n, h = x.shape
    r, h2, f = w.shape
    assert h == h2 and h % 128 == 0 and f % 128 == 0 and n % 8 == 0
    cost = pl.CostEstimate(
        flops=2 * r * n * h * f, transcendentals=0,
        bytes_accessed=x.size * 2 + w.size * 2 + r * n * f * 2)
    return pl.pallas_call(
        _feat_transform_kernel,
        out_shape=jax.ShapeDtypeStruct((r, n, f), jnp.bfloat16),
        grid_spec=pltpu.PrefetchScalarGridSpec(
            num_scalar_prefetch=0,
            grid=(r,),
            in_specs=[
                pl.BlockSpec((n, h), lambda rr: (0, 0)),
                pl.BlockSpec((None, h, f), lambda rr: (rr, 0, 0)),  # squeezed rel dim
            ],
            out_specs=pl.BlockSpec((None, n, f), lambda rr: (rr, 0, 0)),
        ),
        compiler_params=pltpu.CompilerParams(
            dimension_semantics=("parallel",),
            vmem_limit_bytes=32 * 1024 * 1024,
        ),
        cost_estimate=cost,
    )(x, w)


# ---------------------------------------------------------------------------
# Graph glue
# ---------------------------------------------------------------------------
def block_nonzero_flags(a_flat, tile_m, tile_k):
    m, k = a_flat.shape
    nm, nk = m // tile_m, k // tile_k
    blk = jnp.abs(a_flat).reshape(nm, tile_m, nk, tile_k).sum(axis=(1, 3))
    return (blk > 0).astype(jnp.int32).reshape(nm * nk)


def xavier_uniform(key, shape, gain):
    # torch xavier_uniform_ on a 3-D (B, in, out) tensor:
    # fan_in = size(1)*prod(size[2:]), fan_out = size(0)*prod(size[2:])
    receptive = 1
    for d in shape[2:]:
        receptive *= d
    fan_in = shape[1] * receptive
    fan_out = shape[0] * receptive
    bound = gain * (6.0 / (fan_in + fan_out)) ** 0.5
    return jax.random.uniform(key, shape, jnp.float32, -bound, bound)


def egl_rgcn_forward(src, dst, etype, edge_norm, params, num_rels, num_nodes,
                     *, tile_m=128, tile_k=512):
    basis1, wcomp1, b1 = params["basis1"], params["wcomp1"], params["b1"]
    basis2, wcomp2, b2 = params["basis2"], params["wcomp2"], params["b2"]
    nb1, in1, hid = basis1.shape
    nb2, hid2, out_dim = basis2.shape
    assert in1 == num_nodes and hid == hid2

    # basis decomposition: W = w_comp @ basis  (tiny matmul, glue)
    w1 = jnp.matmul(wcomp1, basis1.reshape(nb1, -1)).reshape(num_rels, num_nodes, hid)
    w2 = jnp.matmul(wcomp2, basis2.reshape(nb2, -1)).reshape(num_rels, hid, out_dim)

    # pad node + feature dims to lane-dense multiples of 128 (sliced off at end)
    n_pad = _round_up(num_nodes, 128)
    h_pad = _round_up(hid, 128)
    o_pad = _round_up(out_dim, 128)
    w1p = jnp.zeros((num_rels, n_pad, h_pad), jnp.float32
                    ).at[:, :num_nodes, :hid].set(w1)
    w2p = jnp.zeros((num_rels, h_pad, o_pad), jnp.float32
                    ).at[:, :hid, :out_dim].set(w2)
    b1p = jnp.zeros((h_pad,), jnp.float32).at[:hid].set(b1)
    b2p = jnp.zeros((o_pad,), jnp.float32).at[:out_dim].set(b2)

    # dense (dst, relation*src) adjacency + per-block sparsity flags
    # TODO(synk): densifying the graph is O(R*N^2) glue; at scale this should
    # be an edge/CSR-driven gather kernel instead of a dense adjacency.
    k_dim = num_rels * n_pad
    a_flat = jnp.zeros((n_pad, k_dim), jnp.float32
                       ).at[dst, etype * n_pad + src].add(edge_norm.reshape(-1))

    tile_m = _pick_tile(n_pad, tile_m, 8)
    tile_k = _pick_tile(k_dim, tile_k, 128)
    flags = block_nonzero_flags(a_flat, tile_m, tile_k)
    a_bf = a_flat.astype(jnp.bfloat16)

    # layer 1: h = relu(A @ W1 + b1)   (one-hot features => rows of W1)
    w1_flat = w1p.reshape(k_dim, h_pad).astype(jnp.bfloat16)
    h = agg_matmul(flags, a_bf, w1_flat, b1p, tile_m=tile_m, tile_k=tile_k)

    # layer 2: out = relu(A @ concat_r(h @ W2_r) + b2)
    xw = feat_transform(h.astype(jnp.bfloat16), w2p.astype(jnp.bfloat16))
    out = agg_matmul(flags, a_bf, xw.reshape(k_dim, o_pad), b2p,
                     tile_m=tile_m, tile_k=tile_k)

    # TODO(synk): dropout p=0.0 is identity; stochastic dropout omitted.
    return out[:num_nodes, :out_dim]


if __name__ == "__main__":
    # model / graph sizes (small, consistent with the module)
    num_nodes = 128
    hidden_dim = 32
    out_dim = 16
    num_rels = 4
    num_bases = 2
    num_edges = 512

    key = jax.random.PRNGKey(0)
    k = jax.random.split(key, 8)
    gain = 2.0 ** 0.5  # relu gain

    params = {
        "basis1": xavier_uniform(k[0], (num_bases, num_nodes, hidden_dim), gain),
        "wcomp1": xavier_uniform(k[1], (num_rels, num_bases), gain),
        "b1": jnp.zeros((hidden_dim,), jnp.float32),
        "basis2": xavier_uniform(k[2], (num_bases, hidden_dim, out_dim), gain),
        "wcomp2": xavier_uniform(k[3], (num_rels, num_bases), gain),
        "b2": jnp.zeros((out_dim,), jnp.float32),
    }

    # synthetic graph
    src = jax.random.randint(k[4], (num_edges,), 0, num_nodes)
    dst = jax.random.randint(k[5], (num_edges,), 0, num_nodes)
    etype = jax.random.randint(k[6], (num_edges,), 0, num_rels)
    edge_norm = jax.random.uniform(k[7], (num_edges, 1), jnp.float32, 0.1, 1.0)
    feats = jnp.arange(num_nodes, dtype=jnp.int32)  # node IDs (one-hot features)

    fwd = jax.jit(functools.partial(egl_rgcn_forward,
                                    num_rels=num_rels, num_nodes=num_nodes))
    out = fwd(src, dst, etype, edge_norm, params)
    out = jax.block_until_ready(out)
    assert out.shape == (num_nodes, out_dim)

    # ---- pure-JAX reference with the same bf16 operand quantization ----
    def q(x):  # emulate the kernel's bf16 operand feed (f32 accumulation)
        return x.astype(jnp.bfloat16).astype(jnp.float32)

    w1 = jnp.matmul(params["wcomp1"], params["basis1"].reshape(num_bases, -1)
                    ).reshape(num_rels, num_nodes, hidden_dim)
    w2 = jnp.matmul(params["wcomp2"], params["basis2"].reshape(num_bases, -1)
                    ).reshape(num_rels, hidden_dim, out_dim)
    a = jnp.zeros((num_rels, num_nodes, num_nodes), jnp.float32
                  ).at[etype, dst, src].add(edge_norm.reshape(-1))
    a_q = q(a)
    h_ref = jnp.maximum(jnp.einsum("rvu,ruh->vh", a_q, q(w1)) + params["b1"], 0.0)
    xw_ref = q(jnp.einsum("uh,rho->ruo", q(h_ref), q(w2)))
    out_ref = jnp.maximum(jnp.einsum("rvu,ruo->vo", a_q, xw_ref) + params["b2"], 0.0)

    err = float(jnp.max(jnp.abs(out - out_ref)))
    assert jnp.allclose(out, out_ref, atol=1e-2, rtol=1e-2), f"mismatch vs reference: {err}"
    print("KERNEL_OK")
</pallas_src>

<mosaic_0001>
module attributes {stable_mosaic.version = 11 : i64} {
  func.func private @main(%arg0: i32) attributes {dimension_semantics = [#tpu.dimension_semantics<core_parallel>], iteration_bounds = array<i64: 2>, tpu.core_type = #tpu.core_type<sc_scalar_subcore>, window_params = []} {
    return
  }
}

module attributes {stable_mosaic.version = 11 : i64} {
  func.func private @main(%arg0: i32) attributes {dimension_semantics = [#tpu.dimension_semantics<core_parallel>], iteration_bounds = array<i64: 2>, tpu.core_type = #tpu.core_type<sc_scalar_subcore>, window_params = []} {
    return
  }
}

module attributes {stable_mosaic.version = 11 : i64} {
  func.func @_agg_matmul_kernel(%arg0: i32, %arg1: i32, %arg2: memref<1xi32, #tpu.memory_space<smem>>, %arg3: memref<128x512xbf16, #tpu.memory_space<vmem>>, %arg4: memref<512x128xbf16, #tpu.memory_space<vmem>>, %arg5: memref<1x128xf32, #tpu.memory_space<vmem>>, %arg6: memref<128x128xf32, #tpu.memory_space<vmem>>) attributes {dimension_semantics = [#tpu.dimension_semantics<parallel>, #tpu.dimension_semantics<arbitrary>], iteration_bounds = array<i64: 1, 1>, scalar_prefetch = 1 : i64, scratch_operands = 0 : i64, tpu.core_type = #tpu.core_type<tc>, window_params = [{transform_indices = @transform_0, window_bounds = array<i64: 128, 512>}, {transform_indices = @transform_1, window_bounds = array<i64: 512, 128>}, {pipeline_mode = #tpu.pipeline_mode<synchronous>, transform_indices = @transform_2, window_bounds = array<i64: 1, 128>}, {transform_indices = @transform_3, window_bounds = array<i64: 128, 128>}]} {
    %c0_i32 = arith.constant 0 : i32
    %0 = arith.cmpi eq, %arg1, %c0_i32 : i32
    %1 = arith.extui %0 : i1 to i32
    %c0_i32_0 = arith.constant 0 : i32
    %2 = arith.cmpi ne, %1, %c0_i32_0 : i32
    scf.if %2 {
      %cst = arith.constant 0.000000e+00 : f32
      %13 = vector.broadcast %cst : f32 to vector<128x128xf32>
      %c0 = arith.constant 0 : index
      %c0_5 = arith.constant 0 : index
      %14 = vector.load %arg5[%c0, %c0_5] : memref<1x128xf32, #tpu.memory_space<vmem>>, vector<1x128xf32>
      %15 = vector.broadcast %14 : vector<1x128xf32> to vector<128x128xf32>
      %16 = arith.addf %13, %15 : vector<128x128xf32>
      %c0_6 = arith.constant 0 : index
      %c0_7 = arith.constant 0 : index
      %17 = vector.load %arg6[%c0_6, %c0_7] : memref<128x128xf32, #tpu.memory_space<vmem>>, vector<128x128xf32>
      tpu.vector_store %arg6[%c0_6, %c0_7], %16 {strides = array<i32>} : memref<128x128xf32, #tpu.memory_space<vmem>>, vector<128x128xf32>,
    } else {
    }
    %c1_i32 = arith.constant 1 : i32
    %3 = arith.muli %arg0, %c1_i32 : i32
    %4 = arith.addi %3, %arg1 : i32
    %5 = arith.index_cast %4 : i32 to index
    %6 = memref.load %arg2[%5] : memref<1xi32, #tpu.memory_space<smem>>
    %c0_i32_1 = arith.constant 0 : i32
    %7 = arith.cmpi ne, %6, %c0_i32_1 : i32
    %8 = arith.extui %7 : i1 to i32
    %c0_i32_2 = arith.constant 0 : i32
    %9 = arith.cmpi ne, %8, %c0_i32_2 : i32
    scf.if %9 {
      %c0 = arith.constant 0 : index
      %c0_5 = arith.constant 0 : index
      %13 = vector.load %arg6[%c0, %c0_5] : memref<128x128xf32, #tpu.memory_space<vmem>>, vector<128x128xf32>
      %c0_6 = arith.constant 0 : index
      %c0_7 = arith.constant 0 : index
      %14 = vector.load %arg3[%c0_6, %c0_7] : memref<128x512xbf16, #tpu.memory_space<vmem>>, vector<128x512xbf16>
      %c0_8 = arith.constant 0 : index
      %c0_9 = arith.constant 0 : index
      %15 = vector.load %arg4[%c0_8, %c0_9] : memref<512x128xbf16, #tpu.memory_space<vmem>>, vector<512x128xbf16>
      %cst = arith.constant dense<0.000000e+00> : vector<128x128xf32>
      %16 = tpu.matmul %14, %15, %cst {dimension_numbers = #tpu.dot_dimension_numbers<[1], [0], [0], [1], [0, 0, 1, 1], [], []>} : vector<128x512xbf16>, vector<512x128xbf16>, vector<128x128xf32> -> vector<128x128xf32>
      %17 = arith.addf %13, %16 : vector<128x128xf32>
      %c0_10 = arith.constant 0 : index
      %c0_11 = arith.constant 0 : index
      %18 = vector.load %arg6[%c0_10, %c0_11] : memref<128x128xf32, #tpu.memory_space<vmem>>, vector<128x128xf32>
      tpu.vector_store %arg6[%c0_10, %c0_11], %17 {strides = array<i32>} : memref<128x128xf32, #tpu.memory_space<vmem>>, vector<128x128xf32>,
    } else {
    }
    %c0_i32_3 = arith.constant 0 : i32
    %10 = arith.cmpi eq, %arg1, %c0_i32_3 : i32
    %11 = arith.extui %10 : i1 to i32
    %c0_i32_4 = arith.constant 0 : i32
    %12 = arith.cmpi ne, %11, %c0_i32_4 : i32
    scf.if %12 {
      %c0 = arith.constant 0 : index
      %c0_5 = arith.constant 0 : index
      %13 = vector.load %arg6[%c0, %c0_5] : memref<128x128xf32, #tpu.memory_space<vmem>>, vector<128x128xf32>
      %cst = arith.constant 0.000000e+00 : f32
      %14 = vector.broadcast %cst : f32 to vector<128x128xf32>
      %15 = arith.maximumf %13, %14 : vector<128x128xf32>
      %c0_6 = arith.constant 0 : index
      %c0_7 = arith.constant 0 : index
      %16 = vector.load %arg6[%c0_6, %c0_7] : memref<128x128xf32, #tpu.memory_space<vmem>>, vector<128x128xf32>
      tpu.vector_store %arg6[%c0_6, %c0_7], %15 {strides = array<i32>} : memref<128x128xf32, #tpu.memory_space<vmem>>, vector<128x128xf32>,
    } else {
    }
    return
  }
  func.func @transform_0(%arg0: i32, %arg1: i32, %arg2: memref<1xi32, #tpu.memory_space<smem>>) -> (i32, i32) {
    %c0_i32 = arith.constant 0 : i32
    return %arg0, %arg1 : i32, i32
  }
  func.func @transform_1(%arg0: i32, %arg1: i32, %arg2: memref<1xi32, #tpu.memory_space<smem>>) -> (i32, i32) {
    %c0_i32 = arith.constant 0 : i32
    %c0_i32_0 = arith.constant 0 : i32
    return %arg1, %c0_i32 : i32, i32
  }
  func.func @transform_2(%arg0: i32, %arg1: i32, %arg2: memref<1xi32, #tpu.memory_space<smem>>) -> (i32, i32) {
    %c0_i32 = arith.constant 0 : i32
    %c0_i32_0 = arith.constant 0 : i32
    %c0_i32_1 = arith.constant 0 : i32
    return %c0_i32, %c0_i32_0 : i32, i32
  }
  func.func @transform_3(%arg0: i32, %arg1: i32, %arg2: memref<1xi32, #tpu.memory_space<smem>>) -> (i32, i32) {
    %c0_i32 = arith.constant 0 : i32
    %c0_i32_0 = arith.constant 0 : i32
    return %arg0, %c0_i32 : i32, i32
  }
}

module attributes {stable_mosaic.version = 11 : i64} {
  func.func @_feat_transform_kernel(%arg0: i32, %arg1: memref<128x128xbf16, #tpu.memory_space<vmem>>, %arg2: memref<1x128x128xbf16, #tpu.memory_space<vmem>>, %arg3: memref<1x128x128xbf16, #tpu.memory_space<vmem>>) attributes {dimension_semantics = [#tpu.dimension_semantics<parallel>], iteration_bounds = array<i64: 4>, scalar_prefetch = 0 : i64, scratch_operands = 0 : i64, tpu.core_type = #tpu.core_type<tc>, window_params = [{pipeline_mode = #tpu.pipeline_mode<synchronous>, transform_indices = @transform_0, window_bounds = array<i64: 128, 128>}, {transform_indices = @transform_1, window_bounds = array<i64: 1, 128, 128>}, {transform_indices = @transform_2, window_bounds = array<i64: 1, 128, 128>}]} {
    %c0 = arith.constant 0 : index
    %c0_0 = arith.constant 0 : index
    %0 = vector.load %arg1[%c0, %c0_0] : memref<128x128xbf16, #tpu.memory_space<vmem>>, vector<128x128xbf16>
    %c0_1 = arith.constant 0 : index
    %c0_2 = arith.constant 0 : index
    %c0_3 = arith.constant 0 : index
    %1 = vector.load %arg2[%c0_1, %c0_2, %c0_3] : memref<1x128x128xbf16, #tpu.memory_space<vmem>>, vector<1x128x128xbf16>
    %2 = vector.shape_cast %1 : vector<1x128x128xbf16> to vector<128x128xbf16>
    %cst = arith.constant dense<0.000000e+00> : vector<128x128xf32>
    %3 = tpu.matmul %0, %2, %cst {dimension_numbers = #tpu.dot_dimension_numbers<[1], [0], [0], [1], [0, 0, 1, 1], [], []>} : vector<128x128xbf16>, vector<128x128xbf16>, vector<128x128xf32> -> vector<128x128xf32>
    %4 = arith.truncf %3 : vector<128x128xf32> to vector<128x128xbf16>
    %c0_4 = arith.constant 0 : index
    %c0_5 = arith.constant 0 : index
    %c0_6 = arith.constant 0 : index
    %5 = vector.load %arg3[%c0_4, %c0_5, %c0_6] : memref<1x128x128xbf16, #tpu.memory_space<vmem>>, vector<1x128x128xbf16>
    %6 = vector.shape_cast %5 : vector<1x128x128xbf16> to vector<128x128xbf16>
    %7 = vector.shape_cast %4 : vector<128x128xbf16> to vector<1x128x128xbf16>
    tpu.vector_store %arg3[%c0_4, %c0_5, %c0_6], %7 {strides = array<i32>} : memref<1x128x128xbf16, #tpu.memory_space<vmem>>, vector<1x128x128xbf16>,
    return
  }
  func.func @transform_0(%arg0: i32) -> (i32, i32) {
    %c0_i32 = arith.constant 0 : i32
    %c0_i32_0 = arith.constant 0 : i32
    %c0_i32_1 = arith.constant 0 : i32
    return %c0_i32, %c0_i32_0 : i32, i32
  }
  func.func @transform_1(%arg0: i32) -> (i32, i32, i32) {
    %c0_i32 = arith.constant 0 : i32
    %c0_i32_0 = arith.constant 0 : i32
    %c0_i32_1 = arith.constant 0 : i32
    return %arg0, %c0_i32, %c0_i32_0 : i32, i32, i32
  }
  func.func @transform_2(%arg0: i32) -> (i32, i32, i32) {
    %c0_i32 = arith.constant 0 : i32
    %c0_i32_0 = arith.constant 0 : i32
    %c0_i32_1 = arith.constant 0 : i32
    return %arg0, %c0_i32, %c0_i32_0 : i32, i32, i32
  }
}

</mosaic_0001>

<bundles_post_ra>
// kernel: egl_rgcn_forward.4
= control target key start
LH: loop header
LB: loop body
LE: loop exit
PB: predicated region body
PF: predicated region fallthrough
CT: control target
= control target key end

     0   :  { %s724_s9 = smov 0   ;;  %s782_s0 = inlined_call_operand.vmem [shape: bf16[128,128], index: 0, kind: input, shape index: {}]   ;;  %s783_s1 = inlined_call_operand.vmem [shape: bf16[4,128,128], index: 1, kind: input, shape index: {}]   ;;  %s784_s2 = inlined_call_operand.vmem [shape: bf16[4,128,128], index: 2, kind: output, shape index: {}]  }
   0x1 LB: > { %s505_s10 = sadd.s32 4294967295, %s707_s9   ;;  %p509_p0 = scmp.ge.s32.totalorder %s707_s9, 1  ;;  %s707_s9 = sphi %s724_s9, %s12_s9  }
   0x2   : > { %p112_p1 = scmp.lt.s32.totalorder %s707_s9, 5 }
   0x4   : > { %p113_p2 = pnand %p509_p0, %p112_p1 }
   0x5   : > { %p134_p3 = scmp.lt.s32.totalorder (!%p113_p2), %s505_s10, 3  ;;  %v693_v0 = vld [vmem:[%s782_s0] sm:$0xff] (!%p113_p2)   ;;  %v695_v10 = vld [vmem:[%s782_s0 + $0x8] sm:$0xff] (!%p113_p2)   ;;  %v697_v12 = vld [vmem:[%s782_s0 + $0x10] sm:$0xff] (!%p113_p2)  }
   0x6   : > { %116 = sbr.rel (%p113_p2) target bundleno = 275 (0x113), region = 28  ;;  %v694_v1 = vld [vmem:[%s782_s0 + $0x20] sm:$0xff] (!%p113_p2)   ;;  %645 = vmatprep.mubr.bf16.mxu0 (!%p113_p2), %v693_v0  ;;  %v696_v11 = vld [vmem:[%s782_s0 + $0x28] sm:$0xff] (!%p113_p2)   ;;  %v698_v13 = vld [vmem:[%s782_s0 + $0x30] sm:$0xff] (!%p113_p2)  }
   0x7   : > { %653 = vmatprep.mubr.bf16.mxu1 (!%p113_p2), %v694_v1  ;;  %v699_v14 = vld [vmem:[%s782_s0 + $0x18] sm:$0xff] (!%p113_p2)  }
   0x8   : > { %v700_v15 = vld [vmem:[%s782_s0 + $0x38] sm:$0xff] (!%p113_p2)  }
   0xd   : > { %s786_s10 = smov (!%p134_p3, %s505_s10), 3 }
   0xe   : > { %s548_s15 = sshll.u32 %s786_s10, 6 }
   0xf   : > { %s746_s18 = scalar_lea.vmem %s783_s1, %s548_s15  ;;  %s143_s5 = scalar_lea.vmem %s784_s2, %s548_s15 }
  0x10   : > { %v685_v2 = vld [vmem:[%s746_s18] sm:$0xff]   ;;  %v686_v3 = vld [vmem:[%s746_s18 + $0x8] sm:$0xff]   ;;  %v687_v4 = vld [vmem:[%s746_s18 + $0x10] sm:$0xff]  }
  0x11   : > { %629 = vmatprep.subr.bf16.mxu0 %v685_v2  ;;  %661 = vmatprep.subr.bf16.mxu1 %v685_v2  ;;  %v688_v5 = vld [vmem:[%s746_s18 + $0x18] sm:$0xff]   ;;  %v689_v6 = vld [vmem:[%s746_s18 + $0x20] sm:$0xff]   ;;  %v690_v7 = vld [vmem:[%s746_s18 + $0x28] sm:$0xff]  }
  0x12   : > { %630 = vmatpush3.bf16.msra.mxu0 %v685_v2  ;;  %669 = vmatpush3.bf16.msra.mxu1 %v685_v2  ;;  %v691_v8 = vld [vmem:[%s746_s18 + $0x30] sm:$0xff]   ;;  %v692_v9 = vld [vmem:[%s746_s18 + $0x38] sm:$0xff]  }
  0x13   : > { %631 = vmatprep.subr.bf16.mxu0 %v686_v3  ;;  %662 = vmatprep.subr.bf16.mxu1 %v686_v3 }
  0x16   : > { %632 = vmatpush3.bf16.msra.mxu0 %v686_v3  ;;  %670 = vmatpush3.bf16.msra.mxu1 %v686_v3 }
  0x17   : > { %633 = vmatprep.subr.bf16.mxu0 %v687_v4  ;;  %663 = vmatprep.subr.bf16.mxu1 %v687_v4 }
  0x1a   : > { %634 = vmatpush3.bf16.msra.mxu0 %v687_v4  ;;  %671 = vmatpush3.bf16.msra.mxu1 %v687_v4 }
  0x1b   : > { %635 = vmatprep.subr.bf16.mxu0 %v688_v5  ;;  %664 = vmatprep.subr.bf16.mxu1 %v688_v5 }
  0x1e   : > { %636 = vmatpush3.bf16.msra.mxu0 %v688_v5  ;;  %672 = vmatpush3.bf16.msra.mxu1 %v688_v5 }
  0x1f   : > { %637 = vmatprep.subr.bf16.mxu0 %v689_v6  ;;  %665 = vmatprep.subr.bf16.mxu1 %v689_v6 }
  0x22   : > { %638 = vmatpush3.bf16.msra.mxu0 %v689_v6  ;;  %673 = vmatpush3.bf16.msra.mxu1 %v689_v6 }
  0x23   : > { %639 = vmatprep.subr.bf16.mxu0 %v690_v7  ;;  %666 = vmatprep.subr.bf16.mxu1 %v690_v7 }
  0x26   : > { %640 = vmatpush3.bf16.msra.mxu0 %v690_v7  ;;  %674 = vmatpush3.bf16.msra.mxu1 %v690_v7 }
  0x27   : > { %641 = vmatprep.subr.bf16.mxu0 %v691_v8  ;;  %667 = vmatprep.subr.bf16.mxu1 %v691_v8 }
  0x2a   : > { %642 = vmatpush3.bf16.msra.mxu0 %v691_v8  ;;  %675 = vmatpush3.bf16.msra.mxu1 %v691_v8 }
  0x2b   : > { %643 = vmatprep.subr.bf16.mxu0 %v692_v9  ;;  %668 = vmatprep.subr.bf16.mxu1 %v692_v9 }
  0x2e   : > { %644 = vmatpush3.bf16.msra.mxu0 %v692_v9  ;;  %676 = vmatpush3.bf16.msra.mxu1 %v692_v9 }
  0x31   : > { %646 = vmatmul.mubr.bf16.vlgmr.msra.gmra.mrb[0].mxu0 %v695_v10  ;;  %654 = vmatmul.mubr.bf16.vlgmr.msra.gmra.mrb[0].mxu1 %v696_v11 }
  0x32   : > { %649 = vmatprep.mubr.bf16.mxu0 %v697_v12  ;;  %657 = vmatprep.mubr.bf16.mxu1 %v698_v13 }
  0x39   : > { %650 = vmatmul.mubr.bf16.gmra.mrb[4].mxu0 %v699_v14  ;;  %658 = vmatmul.mubr.bf16.gmra.mrb[4].mxu1 %v700_v15 }
 0x104   : > { %v647_v16 = vpop.f32.mrb[0].mxu0  ;;  %v655_v17 = vpop.f32.mrb[0].mxu1 }
 0x105   : > { %v307_v18 = vpop.f32.mrb[1].mxu0  ;;  %v339_v19 = vpop.f32.mrb[1].mxu1 }
 0x106   : > { %v648_v20 = vpop.f32.mrb[2].mxu0  ;;  %v656_v21 = vpop.f32.mrb[2].mxu1 }
 0x107   : > { %v574_v22 = vpack.c.bf16 %v648_v20, %v647_v16  ;;  %v594_v23 = vpack.c.bf16 %v656_v21, %v655_v17  ;;  %v310_v24 = vpop.f32.mrb[3].mxu0  ;;  %v342_v25 = vpop.f32.mrb[3].mxu1 }
 0x108   : > { %v569_v26 = vpack.c.bf16 %v310_v24, %v307_v18  ;;  %v589_v27 = vpack.c.bf16 %v342_v25, %v339_v19 }
 0x109   : > { %606 = vst [vmem:[%s143_s5 + $0x8] sm:$0xff] %v574_v22   ;;  %610 = vst [vmem:[%s143_s5 + $0x28] sm:$0xff] %v594_v23  }
 0x10a   : > { %570 = vst [vmem:[%s143_s5] sm:$0xff] %v569_v26   ;;  %609 = vst [vmem:[%s143_s5 + $0x20] sm:$0xff] %v589_v27  }
 0x10c   : > { %v651_v28 = vpop.f32.mrb[4].mxu0  ;;  %v659_v29 = vpop.f32.mrb[4].mxu1 }
 0x10d   : > { %v323_v30 = vpop.f32.mrb[5].mxu0  ;;  %v355_v31 = vpop.f32.mrb[5].mxu1 }
 0x10e   : > { %v652_v32 = vpop.f32.mrb[6].mxu0  ;;  %v660_v33 = vpop.f32.mrb[6].mxu1 }
 0x10f   : > { %v584_v34 = vpack.c.bf16 %v652_v32, %v651_v28  ;;  %v604_v35 = vpack.c.bf16 %v660_v33, %v659_v29  ;;  %v326_v36 = vpop.f32.mrb[7].mxu0  ;;  %v358_v37 = vpop.f32.mrb[7].mxu1 }
 0x110   : > { %v579_v38 = vpack.c.bf16 %v326_v36, %v323_v30  ;;  %v599_v39 = vpack.c.bf16 %v358_v37, %v355_v31 }
 0x111   : > { %608 = vst [vmem:[%s143_s5 + $0x18] sm:$0xff] %v584_v34   ;;  %612 = vst [vmem:[%s143_s5 + $0x38] sm:$0xff] %v604_v35  }
 0x112   : > { %607 = vst [vmem:[%s143_s5 + $0x10] sm:$0xff] %v579_v38   ;;  %611 = vst [vmem:[%s143_s5 + $0x30] sm:$0xff] %v599_v39  }
 0x113 PF: > { %s12_s9 = sadd.s32 1, %s707_s9  }
 0x114   : > { %p9_p4 = scmp.ge.s32.totalorder %s12_s9, 6  }
 0x116   :  { %11 = sbr.rel (!%p9_p4) target bundleno = 1 (0x1), region = 58 }

// kernel: egl_rgcn_forward.3
= control target key start
LH: loop header
LB: loop body
LE: loop exit
PB: predicated region body
PF: predicated region fallthrough
CT: control target
= control target key end

     0   :  { %s1533_s0 = inlined_call_operand.<no memory space> [shape: s32[1], index: 0, kind: input, shape index: {}]   ;;  %s1534_s1 = inlined_call_operand.vmem [shape: bf16[128,512], index: 1, kind: input, shape index: {}]   ;;  %s1535_s2 = inlined_call_operand.vmem [shape: bf16[512,128], index: 2, kind: input, shape index: {}]   ;;  %s1536_s3 = inlined_call_operand.vmem [shape: f32[1,128], index: 3, kind: input, shape index: {}]   ;;  %s1537_s4 = inlined_call_operand.vmem [shape: f32[128,128], index: 4, kind: output, shape index: {}]  }
   0x1   :  { %v796_v0 = vld [vmem:[%s1536_s3] ss:$0 sm:$0xff]  ;;  %p797_p0 = scmp.eq.s32.totalorder %s1533_s0, 0 }
   0x2   :  { %29 = vst [vmem:[%s1537_s4] sm:$0xff] %v796_v0  ;;  %30 = vst [vmem:[%s1537_s4 + $0x8] sm:$0xff] %v796_v0  ;;  %v990_v1 = vld [vmem:[%s1535_s2 + $0x40] sm:$0xff] (!%p797_p0)   ;;  %v994_v5 = vld [vmem:[%s1535_s2 + $0x48] sm:$0xff] (!%p797_p0)  }
   0x3   :  { %31 = vst [vmem:[%s1537_s4 + $0x10] sm:$0xff] %v796_v0  ;;  %32 = vst [vmem:[%s1537_s4 + $0x18] sm:$0xff] %v796_v0  ;;  %50 = sbr.rel (%p797_p0) target bundleno = 315 (0x13b), region = 21  ;;  %v991_v2 = vld [vmem:[%s1535_s2 + $0xc0] sm:$0xff] (!%p797_p0)   ;;  %862 = vmatprep.subr.bf16.mxu0 (!%p797_p0), %v990_v1  ;;  %v995_v6 = vld [vmem:[%s1535_s2 + $0xc8] sm:$0xff] (!%p797_p0)  }
   0x4   :  { %33 = vst [vmem:[%s1537_s4 + $0x20] sm:$0xff] %v796_v0  ;;  %34 = vst [vmem:[%s1537_s4 + $0x28] sm:$0xff] %v796_v0  ;;  %v992_v3 = vld [vmem:[%s1535_s2] sm:$0xff] (!%p797_p0)   ;;  %926 = vmatprep.subr.bf16.mxu1 (!%p797_p0), %v991_v2  ;;  %v996_v7 = vld [vmem:[%s1535_s2 + $0x8] sm:$0xff] (!%p797_p0)  }
   0x5   :  { %35 = vst [vmem:[%s1537_s4 + $0x30] sm:$0xff] %v796_v0  ;;  %36 = vst [vmem:[%s1537_s4 + $0x38] sm:$0xff] %v796_v0  ;;  %v993_v4 = vld [vmem:[%s1535_s2 + $0x80] sm:$0xff] (!%p797_p0)   ;;  %863 = vmatpush3.bf16.msra.mxu0 (!%p797_p0), %v992_v3  ;;  %v997_v8 = vld [vmem:[%s1535_s2 + $0x88] sm:$0xff] (!%p797_p0)  }
   0x6   :  { %37 = vst [vmem:[%s1537_s4 + $0x40] sm:$0xff] %v796_v0  ;;  %38 = vst [vmem:[%s1537_s4 + $0x48] sm:$0xff] %v796_v0  ;;  %927 = vmatpush3.bf16.msra.mxu1 (!%p797_p0), %v993_v4  ;;  %864 = vmatprep.subr.bf16.mxu0 (!%p797_p0), %v994_v5  ;;  %v998_v9 = vld [vmem:[%s1535_s2 + $0x50] sm:$0xff] (!%p797_p0)   ;;  %v1002_v13 = vld [vmem:[%s1535_s2 + $0x58] sm:$0xff] (!%p797_p0)  }
   0x7   :  { %39 = vst [vmem:[%s1537_s4 + $0x50] sm:$0xff] %v796_v0  ;;  %40 = vst [vmem:[%s1537_s4 + $0x58] sm:$0xff] %v796_v0  ;;  %928 = vmatprep.subr.bf16.mxu1 (!%p797_p0), %v995_v6  ;;  %v999_v10 = vld [vmem:[%s1535_s2 + $0xd0] sm:$0xff] (!%p797_p0)   ;;  %v1003_v14 = vld [vmem:[%s1535_s2 + $0xd8] sm:$0xff] (!%p797_p0)  }
   0x8   :  { %41 = vst [vmem:[%s1537_s4 + $0x60] sm:$0xff] %v796_v0  ;;  %42 = vst [vmem:[%s1537_s4 + $0x68] sm:$0xff] %v796_v0  ;;  %v1000_v11 = vld [vmem:[%s1535_s2 + $0x10] sm:$0xff] (!%p797_p0)   ;;  %v1004_v15 = vld [vmem:[%s1535_s2 + $0x18] sm:$0xff] (!%p797_p0)  }
   0x9   :  { %43 = vst [vmem:[%s1537_s4 + $0x70] sm:$0xff] %v796_v0  ;;  %44 = vst [vmem:[%s1537_s4 + $0x78] sm:$0xff] %v796_v0  ;;  %865 = vmatpush3.bf16.msra.mxu0 (!%p797_p0), %v996_v7  ;;  %v1001_v12 = vld [vmem:[%s1535_s2 + $0x90] sm:$0xff] (!%p797_p0)   ;;  %v1005_v16 = vld [vmem:[%s1535_s2 + $0x98] sm:$0xff] (!%p797_p0)  }
   0xa   :  { %929 = vmatpush3.bf16.msra.mxu1 %v997_v8  ;;  %866 = vmatprep.subr.bf16.mxu0 %v998_v9  ;;  %v1006_v17 = vld [vmem:[%s1535_s2 + $0x60] sm:$0xff]   ;;  %v1010_v21 = vld [vmem:[%s1535_s2 + $0x68] sm:$0xff]   ;;  %v1014_v25 = vld [vmem:[%s1535_s2 + $0x70] sm:$0xff]  }
   0xb   :  { %930 = vmatprep.subr.bf16.mxu1 %v999_v10  ;;  %v1007_v18 = vld [vmem:[%s1535_s2 + $0xe0] sm:$0xff]   ;;  %v1011_v22 = vld [vmem:[%s1535_s2 + $0xe8] sm:$0xff]   ;;  %v1015_v26 = vld [vmem:[%s1535_s2 + $0xf0] sm:$0xff]  }
   0xc   :  { %v1008_v19 = vld [vmem:[%s1535_s2 + $0x20] sm:$0xff]   ;;  %v1012_v23 = vld [vmem:[%s1535_s2 + $0x28] sm:$0xff]   ;;  %v1016_v27 = vld [vmem:[%s1535_s2 + $0x30] sm:$0xff]  }
   0xd   :  { %867 = vmatpush3.bf16.msra.mxu0 %v1000_v11  ;;  %v1009_v20 = vld [vmem:[%s1535_s2 + $0xa0] sm:$0xff]   ;;  %v1013_v24 = vld [vmem:[%s1535_s2 + $0xa8] sm:$0xff]   ;;  %v1017_v28 = vld [vmem:[%s1535_s2 + $0xb0] sm:$0xff]  }
   0xe   :  { %931 = vmatpush3.bf16.msra.mxu1 %v1001_v12  ;;  %868 = vmatprep.subr.bf16.mxu0 %v1002_v13  ;;  %v1018_v29 = vld [vmem:[%s1535_s2 + $0x78] sm:$0xff]   ;;  %v1022_v33 = vld [vmem:[%s1534_s1] ss:$16 sps:$4 sm:$0xff]   ;;  %v1024_v34 = vld [vmem:[%s1534_s1 + $0x4] ss:$16 sps:$4 sm:$0xff]  }
   0xf   :  { %932 = vmatprep.subr.bf16.mxu1 %v1003_v14  ;;  %v1019_v30 = vld [vmem:[%s1535_s2 + $0xf8] sm:$0xff]   ;;  %547 = vmatprep.mubr.bf16.mxu0 %v1024_v34  ;;  %v1028_v37 = vld [vmem:[%s1534_s1 + $0x24] ss:$16 sps:$4 sm:$0xff]   ;;  %v1032_v39 = vld [vmem:[%s1534_s1 + $0x20] ss:$16 sps:$4 sm:$0xff]  }
  0x10   :  { %v1020_v31 = vld [vmem:[%s1535_s2 + $0x38] sm:$0xff]   ;;  %v1034_v41 = vld [vmem:[%s1534_s1 + $0x44] ss:$16 sps:$4 sm:$0xff]   ;;  %v1038_v43 = vld [vmem:[%s1534_s1 + $0x40] ss:$16 sps:$4 sm:$0xff]  }
  0x11   :  { %869 = vmatpush3.bf16.msra.mxu0 %v1004_v15  ;;  %v1021_v32 = vld [vmem:[%s1535_s2 + $0xb8] sm:$0xff]   ;;  %v1040_v45 = vld [vmem:[%s1534_s1 + $0x64] ss:$16 sps:$4 sm:$0xff]   ;;  %v1044_v47 = vld [vmem:[%s1534_s1 + $0x60] ss:$16 sps:$4 sm:$0xff]  }
  0x12   :  { %933 = vmatpush3.bf16.msra.mxu1 %v1005_v16  ;;  %870 = vmatprep.subr.bf16.mxu0 %v1006_v17  ;;  %v1025_v35 = vld [vmem:[%s1534_s1 + $0x8] ss:$16 sps:$4 sm:$0xff]   ;;  %v1027_v36 = vld [vmem:[%s1534_s1 + $0xc] ss:$16 sps:$4 sm:$0xff]   ;;  %v1046_v49 = vld [vmem:[%s1534_s1 + $0x84] ss:$16 sps:$4 sm:$0xff]  }
  0x13   :  { %934 = vmatprep.subr.bf16.mxu1 %v1007_v18  ;;  %644 = vmatprep.mubr.bf16.mxu1 %v1027_v36  ;;  %v1030_v38 = vld [vmem:[%s1534_s1 + $0x2c] ss:$16 sps:$4 sm:$0xff]   ;;  %v1033_v40 = vld [vmem:[%s1534_s1 + $0x28] ss:$16 sps:$4 sm:$0xff]   ;;  %v1050_v51 = vld [vmem:[%s1534_s1 + $0x80] ss:$16 sps:$4 sm:$0xff]  }
  0x14   :  { %v1036_v42 = vld [vmem:[%s1534_s1 + $0x4c] ss:$16 sps:$4 sm:$0xff]   ;;  %v1039_v44 = vld [vmem:[%s1534_s1 + $0x48] ss:$16 sps:$4 sm:$0xff]   ;;  %v1052_v53 = vld [vmem:[%s1534_s1 + $0xa4] ss:$16 sps:$4 sm:$0xff]  }
  0x15   :  { %871 = vmatpush3.bf16.msra.mxu0 %v1008_v19  ;;  %v1042_v46 = vld [vmem:[%s1534_s1 + $0x6c] ss:$16 sps:$4 sm:$0xff]   ;;  %v1045_v48 = vld [vmem:[%s1534_s1 + $0x68] ss:$16 sps:$4 sm:$0xff]   ;;  %v1056_v55 = vld [vmem:[%s1534_s1 + $0xa0] ss:$16 sps:$4 sm:$0xff]  }
  0x16   :  { %935 = vmatpush3.bf16.msra.mxu1 %v1009_v20  ;;  %872 = vmatprep.subr.bf16.mxu0 %v1010_v21  ;;  %v1048_v50 = vld [vmem:[%s1534_s1 + $0x8c] ss:$16 sps:$4 sm:$0xff]   ;;  %v1051_v52 = vld [vmem:[%s1534_s1 + $0x88] ss:$16 sps:$4 sm:$0xff]   ;;  %v1058_v57 = vld [vmem:[%s1534_s1 + $0xc4] ss:$16 sps:$4 sm:$0xff]  }
  0x17   :  { %936 = vmatprep.subr.bf16.mxu1 %v1011_v22  ;;  %v1054_v54 = vld [vmem:[%s1534_s1 + $0xac] ss:$16 sps:$4 sm:$0xff]   ;;  %v1057_v56 = vld [vmem:[%s1534_s1 + $0xa8] ss:$16 sps:$4 sm:$0xff]   ;;  %v1062_v59 = vld [vmem:[%s1534_s1 + $0xc0] ss:$16 sps:$4 sm:$0xff]  }
  0x18   :  { %v1060_v58 = vld [vmem:[%s1534_s1 + $0xcc] ss:$16 sps:$4 sm:$0xff]   ;;  %v1063_v60 = vld [vmem:[%s1534_s1 + $0xc8] ss:$16 sps:$4 sm:$0xff]   ;;  %v1064_v61 = vld [vmem:[%s1534_s1 + $0xe4] ss:$16 sps:$4 sm:$0xff]  }
  0x19   :  { %873 = vmatpush3.bf16.msra.mxu0 %v1012_v23  ;;  %v1066_v62 = vld [vmem:[%s1534_s1 + $0xec] ss:$16 sps:$4 sm:$0xff]   ;;  %v1068_v63 = vld [vmem:[%s1534_s1 + $0xe0] ss:$16 sps:$4 sm:$0xff]   ;;  %v1069_v0 = vld [vmem:[%s1534_s1 + $0xe8] ss:$16 sps:$4 sm:$0xff]  }
  0x1a   :  { %937 = vmatpush3.bf16.msra.mxu1 %v1013_v24  ;;  %874 = vmatprep.subr.bf16.mxu0 %v1014_v25  ;;  %v51_v10 = vld [vmem:[%s1537_s4] sm:$0xff]  ;;  %v52_v15 = vld [vmem:[%s1537_s4 + $0x8] sm:$0xff] }
  0x1b   :  { %938 = vmatprep.subr.bf16.mxu1 %v1015_v26 }
  0x1d   :  { %875 = vmatpush3.bf16.msra.mxu0 %v1016_v27 }
  0x1e   :  { %939 = vmatpush3.bf16.msra.mxu1 %v1017_v28  ;;  %876 = vmatprep.subr.bf16.mxu0 %v1018_v29  ;;  %v53_v28 = vld [vmem:[%s1537_s4 + $0x10] sm:$0xff] }
  0x1f   :  { %940 = vmatprep.subr.bf16.mxu1 %v1019_v30 }
  0x21   :  { %877 = vmatpush3.bf16.msra.mxu0 %v1020_v31 }
  0x22   :  { %941 = vmatpush3.bf16.msra.mxu1 %v1021_v32 }
  0x24   :  { %548 = vmatmul.mubr.bf16.vlgmr.msra.gmra.mrb[0].mxu0 %v1022_v33  ;;  %v54_v33 = vld [vmem:[%s1537_s4 + $0x18] sm:$0xff] }
  0x25   :  { %645 = vmatmul.mubr.bf16.vlgmr.msra.gmra.mrb[0].mxu1 %v1025_v35  ;;  %555 = vmatprep.mubr.bf16.mxu0 %v1028_v37 }
  0x26   :  { %652 = vmatprep.mubr.bf16.mxu1 %v1030_v38 }
  0x2c   :  { %556 = vmatmul.mubr.bf16.gmra.mrb[4].mxu0 %v1032_v39 }
  0x2d   :  { %653 = vmatmul.mubr.bf16.gmra.mrb[4].mxu1 %v1033_v40  ;;  %563 = vmatprep.mubr.bf16.mxu0 %v1034_v41 }
  0x2e   :  { %660 = vmatprep.mubr.bf16.mxu1 %v1036_v42 }
  0x34   :  { %564 = vmatmul.mubr.bf16.gmra.mrb[8].mxu0 %v1038_v43 }
  0x35   :  { %661 = vmatmul.mubr.bf16.gmra.mrb[8].mxu1 %v1039_v44  ;;  %571 = vmatprep.mubr.bf16.mxu0 %v1040_v45 }
  0x36   :  { %668 = vmatprep.mubr.bf16.mxu1 %v1042_v46  ;;  %v55_v46 = vld [vmem:[%s1537_s4 + $0x20] sm:$0xff] }
  0x3c   :  { %572 = vmatmul.mubr.bf16.gmra.mrb[12].mxu0 %v1044_v47 }
  0x3d   :  { %669 = vmatmul.mubr.bf16.gmra.mrb[12].mxu1 %v1045_v48  ;;  %579 = vmatprep.mubr.bf16.mxu0 %v1046_v49 }
  0x3e   :  { %676 = vmatprep.mubr.bf16.mxu1 %v1048_v50 }
  0x44   :  { %580 = vmatmul.mubr.bf16.gmra.mrb[16].mxu0 %v1050_v51  ;;  %v56_v51 = vld [vmem:[%s1537_s4 + $0x28] sm:$0xff] }
  0x45   :  { %677 = vmatmul.mubr.bf16.gmra.mrb[16].mxu1 %v1051_v52  ;;  %587 = vmatprep.mubr.bf16.mxu0 %v1052_v53 }
  0x46   :  { %684 = vmatprep.mubr.bf16.mxu1 %v1054_v54 }
  0x4c   :  { %588 = vmatmul.mubr.bf16.gmra.mrb[20].mxu0 %v1056_v55 }
  0x4d   :  { %685 = vmatmul.mubr.bf16.gmra.mrb[20].mxu1 %v1057_v56  ;;  %595 = vmatprep.mubr.bf16.mxu0 %v1058_v57 }
  0x4e   :  { %692 = vmatprep.mubr.bf16.mxu1 %v1060_v58 }
  0x54   :  { %596 = vmatmul.mubr.bf16.gmra.mrb[24].mxu0 %v1062_v59 }
  0x55   :  { %693 = vmatmul.mubr.bf16.gmra.mrb[24].mxu1 %v1063_v60  ;;  %603 = vmatprep.mubr.bf16.mxu0 %v1064_v61 }
  0x56   :  { %700 = vmatprep.mubr.bf16.mxu1 %v1066_v62 }
  0x5c   :  { %604 = vmatmul.mubr.bf16.gmra.mrb[28].mxu0 %v1068_v63 }
  0x5d   :  { %701 = vmatmul.mubr.bf16.gmra.mrb[28].mxu1 %v1069_v0  ;;  %v57_v0 = vld [vmem:[%s1537_s4 + $0x30] sm:$0xff] }
  0xf7   :  { %v878_v1 = vpop.f32.mrb[0].mxu0 }
  0xf8   :  { %v942_v2 = vpop.f32.mrb[0].mxu1  ;;  %v879_v3 = vpop.f32.mrb[1].mxu0 }
  0xf9   :  { %v880_v4 = vadd.f32 %v879_v3, %v878_v1  ;;  %v943_v5 = vpop.f32.mrb[1].mxu1  ;;  %v881_v6 = vpop.f32.mrb[2].mxu0 }
  0xfa   :  { %v944_v7 = vadd.f32 %v943_v5, %v942_v2  ;;  %v945_v8 = vpop.f32.mrb[2].mxu1  ;;  %v882_v9 = vpop.f32.mrb[3].mxu0  ;;  %v58_v5 = vld [vmem:[%s1537_s4 + $0x38] sm:$0xff] }
  0xfb   :  { %v883_v11 = vadd.f32 %v882_v9, %v881_v6  ;;  %v946_v12 = vpop.f32.mrb[3].mxu1 }
  0xfc   :  { %v647_v13 = vadd.f32 %v944_v7, %v880_v4  ;;  %v947_v14 = vadd.f32 %v946_v12, %v945_v8 }
  0xfe   :  { %v709_v16 = vadd.f32 %v647_v13, %v51_v10  ;;  %v650_v17 = vadd.f32 %v947_v14, %v883_v11 }
  0xff   :  { %v884_v18 = vpop.f32.mrb[4].mxu0 }
 0x100   :  { %725 = vst [vmem:[%s1537_s4] sm:$0xff] %v709_v16  ;;  %v710_v19 = vadd.f32 %v650_v17, %v52_v15  ;;  %v948_v20 = vpop.f32.mrb[4].mxu1  ;;  %v885_v21 = vpop.f32.mrb[5].mxu0 }
 0x101   :  { %v886_v22 = vadd.f32 %v885_v21, %v884_v18  ;;  %v949_v23 = vpop.f32.mrb[5].mxu1  ;;  %v887_v24 = vpop.f32.mrb[6].mxu0  ;;  %v59_v18 = vld [vmem:[%s1537_s4 + $0x40] sm:$0xff] }
 0x102   :  { %726 = vst [vmem:[%s1537_s4 + $0x8] sm:$0xff] %v710_v19  ;;  %v950_v25 = vadd.f32 %v949_v23, %v948_v20  ;;  %v951_v26 = vpop.f32.mrb[6].mxu1  ;;  %v888_v27 = vpop.f32.mrb[7].mxu0  ;;  %v60_v23 = vld [vmem:[%s1537_s4 + $0x48] sm:$0xff] }
 0x103   :  { %v889_v29 = vadd.f32 %v888_v27, %v887_v24  ;;  %v952_v30 = vpop.f32.mrb[7].mxu1 }
 0x104   :  { %v655_v31 = vadd.f32 %v950_v25, %v886_v22  ;;  %v953_v32 = vadd.f32 %v952_v30, %v951_v26 }
 0x106   :  { %v711_v34 = vadd.f32 %v655_v31, %v53_v28  ;;  %v658_v35 = vadd.f32 %v953_v32, %v889_v29 }
 0x107   :  { %v890_v36 = vpop.f32.mrb[8].mxu0 }
 0x108   :  { %727 = vst [vmem:[%s1537_s4 + $0x10] sm:$0xff] %v711_v34  ;;  %v712_v37 = vadd.f32 %v658_v35, %v54_v33  ;;  %v954_v38 = vpop.f32.mrb[8].mxu1  ;;  %v891_v39 = vpop.f32.mrb[9].mxu0 }
 0x109   :  { %v892_v40 = vadd.f32 %v891_v39, %v890_v36  ;;  %v955_v41 = vpop.f32.mrb[9].mxu1  ;;  %v893_v42 = vpop.f32.mrb[10].mxu0  ;;  %v61_v36 = vld [vmem:[%s1537_s4 + $0x50] sm:$0xff] }
 0x10a   :  { %728 = vst [vmem:[%s1537_s4 + $0x18] sm:$0xff] %v712_v37  ;;  %v956_v43 = vadd.f32 %v955_v41, %v954_v38  ;;  %v957_v44 = vpop.f32.mrb[10].mxu1  ;;  %v894_v45 = vpop.f32.mrb[11].mxu0  ;;  %v62_v41 = vld [vmem:[%s1537_s4 + $0x58] sm:$0xff] }
 0x10b   :  { %v895_v47 = vadd.f32 %v894_v45, %v893_v42  ;;  %v958_v48 = vpop.f32.mrb[11].mxu1 }
 0x10c   :  { %v663_v49 = vadd.f32 %v956_v43, %v892_v40  ;;  %v959_v50 = vadd.f32 %v958_v48, %v957_v44 }
 0x10e   :  { %v713_v52 = vadd.f32 %v663_v49, %v55_v46  ;;  %v666_v53 = vadd.f32 %v959_v50, %v895_v47 }
 0x10f   :  { %v896_v54 = vpop.f32.mrb[12].mxu0 }
 0x110   :  { %729 = vst [vmem:[%s1537_s4 + $0x20] sm:$0xff] %v713_v52  ;;  %v714_v55 = vadd.f32 %v666_v53, %v56_v51  ;;  %v960_v56 = vpop.f32.mrb[12].mxu1  ;;  %v897_v57 = vpop.f32.mrb[13].mxu0 }
 0x111   :  { %v898_v58 = vadd.f32 %v897_v57, %v896_v54  ;;  %v961_v59 = vpop.f32.mrb[13].mxu1  ;;  %v899_v60 = vpop.f32.mrb[14].mxu0  ;;  %v63_v54 = vld [vmem:[%s1537_s4 + $0x60] sm:$0xff] }
 0x112   :  { %730 = vst [vmem:[%s1537_s4 + $0x28] sm:$0xff] %v714_v55  ;;  %v962_v61 = vadd.f32 %v961_v59, %v960_v56  ;;  %v963_v62 = vpop.f32.mrb[14].mxu1  ;;  %v900_v63 = vpop.f32.mrb[15].mxu0  ;;  %v64_v59 = vld [vmem:[%s1537_s4 + $0x68] sm:$0xff] }
 0x113   :  { %v901_v1 = vadd.f32 %v900_v63, %v899_v60  ;;  %v964_v2 = vpop.f32.mrb[15].mxu1 }
 0x114   :  { %v671_v3 = vadd.f32 %v962_v61, %v898_v58  ;;  %v965_v4 = vadd.f32 %v964_v2, %v963_v62 }
 0x116   :  { %v715_v6 = vadd.f32 %v671_v3, %v57_v0  ;;  %v674_v7 = vadd.f32 %v965_v4, %v901_v1 }
 0x117   :  { %v902_v8 = vpop.f32.mrb[16].mxu0 }
 0x118   :  { %731 = vst [vmem:[%s1537_s4 + $0x30] sm:$0xff] %v715_v6  ;;  %v716_v9 = vadd.f32 %v674_v7, %v58_v5  ;;  %v966_v10 = vpop.f32.mrb[16].mxu1  ;;  %v903_v11 = vpop.f32.mrb[17].mxu0 }
 0x119   :  { %v904_v12 = vadd.f32 %v903_v11, %v902_v8  ;;  %v967_v13 = vpop.f32.mrb[17].mxu1  ;;  %v905_v14 = vpop.f32.mrb[18].mxu0  ;;  %v65_v8 = vld [vmem:[%s1537_s4 + $0x70] sm:$0xff] }
 0x11a   :  { %732 = vst [vmem:[%s1537_s4 + $0x38] sm:$0xff] %v716_v9  ;;  %v968_v15 = vadd.f32 %v967_v13, %v966_v10  ;;  %v969_v16 = vpop.f32.mrb[18].mxu1  ;;  %v906_v17 = vpop.f32.mrb[19].mxu0  ;;  %v66_v13 = vld [vmem:[%s1537_s4 + $0x78] sm:$0xff] }
 0x11b   :  { %v907_v19 = vadd.f32 %v906_v17, %v905_v14  ;;  %v970_v20 = vpop.f32.mrb[19].mxu1 }
 0x11c   :  { %v679_v21 = vadd.f32 %v968_v15, %v904_v12  ;;  %v971_v22 = vadd.f32 %v970_v20, %v969_v16 }
 0x11e   :  { %v717_v24 = vadd.f32 %v679_v21, %v59_v18  ;;  %v682_v25 = vadd.f32 %v971_v22, %v907_v19 }
 0x11f   :  { %v908_v26 = vpop.f32.mrb[20].mxu0 }
 0x120   :  { %733 = vst [vmem:[%s1537_s4 + $0x40] sm:$0xff] %v717_v24  ;;  %v718_v27 = vadd.f32 %v682_v25, %v60_v23  ;;  %v972_v28 = vpop.f32.mrb[20].mxu1  ;;  %v909_v29 = vpop.f32.mrb[21].mxu0 }
 0x121   :  { %v910_v30 = vadd.f32 %v909_v29, %v908_v26  ;;  %v973_v31 = vpop.f32.mrb[21].mxu1  ;;  %v911_v32 = vpop.f32.mrb[22].mxu0 }
 0x122   :  { %734 = vst [vmem:[%s1537_s4 + $0x48] sm:$0xff] %v718_v27  ;;  %v974_v33 = vadd.f32 %v973_v31, %v972_v28  ;;  %v975_v34 = vpop.f32.mrb[22].mxu1  ;;  %v912_v35 = vpop.f32.mrb[23].mxu0 }
 0x123   :  { %v913_v37 = vadd.f32 %v912_v35, %v911_v32  ;;  %v976_v38 = vpop.f32.mrb[23].mxu1 }
 0x124   :  { %v687_v39 = vadd.f32 %v974_v33, %v910_v30  ;;  %v977_v40 = vadd.f32 %v976_v38, %v975_v34 }
 0x126   :  { %v719_v42 = vadd.f32 %v687_v39, %v61_v36  ;;  %v690_v43 = vadd.f32 %v977_v40, %v913_v37 }
 0x127   :  { %v914_v44 = vpop.f32.mrb[24].mxu0 }
 0x128   :  { %735 = vst [vmem:[%s1537_s4 + $0x50] sm:$0xff] %v719_v42  ;;  %v720_v45 = vadd.f32 %v690_v43, %v62_v41  ;;  %v978_v46 = vpop.f32.mrb[24].mxu1  ;;  %v915_v47 = vpop.f32.mrb[25].mxu0 }
 0x129   :  { %v916_v48 = vadd.f32 %v915_v47, %v914_v44  ;;  %v979_v49 = vpop.f32.mrb[25].mxu1  ;;  %v917_v50 = vpop.f32.mrb[26].mxu0 }
 0x12a   :  { %736 = vst [vmem:[%s1537_s4 + $0x58] sm:$0xff] %v720_v45  ;;  %v980_v51 = vadd.f32 %v979_v49, %v978_v46  ;;  %v981_v52 = vpop.f32.mrb[26].mxu1  ;;  %v918_v53 = vpop.f32.mrb[27].mxu0 }
 0x12b   :  { %v919_v55 = vadd.f32 %v918_v53, %v917_v50  ;;  %v982_v56 = vpop.f32.mrb[27].mxu1 }
 0x12c   :  { %v695_v57 = vadd.f32 %v980_v51, %v916_v48  ;;  %v983_v58 = vadd.f32 %v982_v56, %v981_v52 }
 0x12e   :  { %v721_v60 = vadd.f32 %v695_v57, %v63_v54  ;;  %v698_v61 = vadd.f32 %v983_v58, %v919_v55 }
 0x12f   :  { %v920_v62 = vpop.f32.mrb[28].mxu0 }
 0x130   :  { %737 = vst [vmem:[%s1537_s4 + $0x60] sm:$0xff] %v721_v60  ;;  %v722_v63 = vadd.f32 %v698_v61, %v64_v59  ;;  %v984_v0 = vpop.f32.mrb[28].mxu1  ;;  %v921_v1 = vpop.f32.mrb[29].mxu0 }
 0x131   :  { %v922_v2 = vadd.f32 %v921_v1, %v920_v62  ;;  %v985_v3 = vpop.f32.mrb[29].mxu1  ;;  %v923_v4 = vpop.f32.mrb[30].mxu0 }
 0x132   :  { %738 = vst [vmem:[%s1537_s4 + $0x68] sm:$0xff] %v722_v63  ;;  %v986_v5 = vadd.f32 %v985_v3, %v984_v0  ;;  %v987_v6 = vpop.f32.mrb[30].mxu1  ;;  %v924_v7 = vpop.f32.mrb[31].mxu0 }
 0x133   :  { %v925_v9 = vadd.f32 %v924_v7, %v923_v4  ;;  %v988_v10 = vpop.f32.mrb[31].mxu1 }
 0x134   :  { %v703_v11 = vadd.f32 %v986_v5, %v922_v2  ;;  %v989_v12 = vadd.f32 %v988_v10, %v987_v6 }
 0x136   :  { %v723_v14 = vadd.f32 %v703_v11, %v65_v8  ;;  %v706_v15 = vadd.f32 %v989_v12, %v925_v9 }
 0x138   :  { %739 = vst [vmem:[%s1537_s4 + $0x70] sm:$0xff] %v723_v14  ;;  %v724_v16 = vadd.f32 %v706_v15, %v66_v13 }
 0x13a   :  { %740 = vst [vmem:[%s1537_s4 + $0x78] sm:$0xff] %v724_v16 }
 0x13b PF:  { %v744_v17 = vld [vmem:[%s1537_s4] sm:$0xff]  ;;  %v745_v18 = vld [vmem:[%s1537_s4 + $0x8] sm:$0xff]  ;;  %v746_v19 = vld [vmem:[%s1537_s4 + $0x10] sm:$0xff] }
 0x13c   :  { %v760_v20 = vmax.f32 %v744_v17, 0.0  ;;  %v761_v21 = vmax.f32 %v745_v18, 0.0  ;;  %v762_v22 = vmax.f32 %v746_v19, 0.0  ;;  %v747_v23 = vld [vmem:[%s1537_s4 + $0x18] sm:$0xff]  ;;  %v748_v24 = vld [vmem:[%s1537_s4 + $0x20] sm:$0xff]  ;;  %v749_v25 = vld [vmem:[%s1537_s4 + $0x28] sm:$0xff] }
 0x13d   :  { %v763_v26 = vmax.f32 %v747_v23, 0.0  ;;  %v764_v27 = vmax.f32 %v748_v24, 0.0  ;;  %v765_v28 = vmax.f32 %v749_v25, 0.0  ;;  %v750_v29 = vld [vmem:[%s1537_s4 + $0x30] sm:$0xff]  ;;  %v751_v30 = vld [vmem:[%s1537_s4 + $0x38] sm:$0xff] }
 0x13e   :  { %v752_v31 = vld [vmem:[%s1537_s4 + $0x40] sm:$0xff]  ;;  %776 = vst [vmem:[%s1537_s4] sm:$0xff] %v760_v20  ;;  %777 = vst [vmem:[%s1537_s4 + $0x8] sm:$0xff] %v761_v21  ;;  %v766_v32 = vmax.f32 %v750_v29, 0.0  ;;  %v767_v33 = vmax.f32 %v751_v30, 0.0  ;;  %v753_v35 = vld [vmem:[%s1537_s4 + $0x48] sm:$0xff] }
 0x13f   :  { %778 = vst [vmem:[%s1537_s4 + $0x10] sm:$0xff] %v762_v22  ;;  %v768_v34 = vmax.f32 %v752_v31, 0.0  ;;  %v754_v36 = vld [vmem:[%s1537_s4 + $0x50] sm:$0xff]  ;;  %v755_v37 = vld [vmem:[%s1537_s4 + $0x58] sm:$0xff]  ;;  %779 = vst [vmem:[%s1537_s4 + $0x18] sm:$0xff] %v763_v26  ;;  %v769_v38 = vmax.f32 %v753_v35, 0.0 }
 0x140   :  { %780 = vst [vmem:[%s1537_s4 + $0x20] sm:$0xff] %v764_v27  ;;  %781 = vst [vmem:[%s1537_s4 + $0x28] sm:$0xff] %v765_v28  ;;  %v770_v39 = vmax.f32 %v754_v36, 0.0  ;;  %v771_v40 = vmax.f32 %v755_v37, 0.0  ;;  %v756_v41 = vld [vmem:[%s1537_s4 + $0x60] sm:$0xff]  ;;  %v757_v42 = vld [vmem:[%s1537_s4 + $0x68] sm:$0xff] }
 0x141   :  { %v758_v43 = vld [vmem:[%s1537_s4 + $0x70] sm:$0xff]  ;;  %782 = vst [vmem:[%s1537_s4 + $0x30] sm:$0xff] %v766_v32  ;;  %783 = vst [vmem:[%s1537_s4 + $0x38] sm:$0xff] %v767_v33  ;;  %v772_v44 = vmax.f32 %v756_v41, 0.0  ;;  %v773_v45 = vmax.f32 %v757_v42, 0.0  ;;  %v759_v47 = vld [vmem:[%s1537_s4 + $0x78] sm:$0xff] }
 0x142   :  { %784 = vst [vmem:[%s1537_s4 + $0x40] sm:$0xff] %v768_v34  ;;  %v774_v46 = vmax.f32 %v758_v43, 0.0  ;;  %785 = vst [vmem:[%s1537_s4 + $0x48] sm:$0xff] %v769_v38  ;;  %v775_v48 = vmax.f32 %v759_v47, 0.0 }
 0x143   :  { %786 = vst [vmem:[%s1537_s4 + $0x50] sm:$0xff] %v770_v39  ;;  %787 = vst [vmem:[%s1537_s4 + $0x58] sm:$0xff] %v771_v40 }
 0x144   :  { %788 = vst [vmem:[%s1537_s4 + $0x60] sm:$0xff] %v772_v44  ;;  %789 = vst [vmem:[%s1537_s4 + $0x68] sm:$0xff] %v773_v45 }
 0x145   :  { %790 = vst [vmem:[%s1537_s4 + $0x70] sm:$0xff] %v774_v46  ;;  %791 = vst [vmem:[%s1537_s4 + $0x78] sm:$0xff] %v775_v48 }

</bundles_post_ra>
